<compile_context>
chip_gen: v6e
topology: v6e:2x2x1
jax: 0.10.0
libtpu: 0.0.40
codegen_flags: <defaults>
</compile_context>

<pallas_src>
import jax
import jax.numpy as jnp
from jax.experimental import pallas as pl
from jax.experimental.pallas import tpu as pltpu

EPS = 1e-5  # PyTorch InstanceNorm2d default eps


def _upblock_kernel(x_ref, w1_ref, b1_ref, w2_ref, b2_ref, proj_ref, o_ref):
    """Fused conv3x3 -> IN -> ReLU -> conv3x3 -> IN -> ReLU for one batch image.

    x_ref   : (1, H, W*Cin)      lane-dense NHWC slab (channel fastest)
    w*_ref  : (3*W*Cin*, W*Cout) block-banded conv weights (kx taps + W-pad baked in)
    b*_ref  : (1, W*Cout)        biases pre-tiled per lane
    proj_ref: (W*Cout, W*Cout)   0/1 same-channel projection, pre-scaled by 1/(H*W)
    o_ref   : (1, H, W*Cout)
    """

    def shift_rows(v, direction):
        # direction=+1: out[r] = v[r-1], out[0]     = 0   (top halo row)
        # direction=-1: out[r] = v[r+1], out[H-1]   = 0   (bottom halo row)
        rows = v.shape[0]
        rolled = pltpu.roll(v, direction % rows, axis=0)      # XLU sublane rotate
        row_id = jax.lax.broadcasted_iota(jnp.int32, v.shape, 0)
        edge = 0 if direction > 0 else rows - 1
        return jnp.where(row_id == edge, 0.0, rolled)

    def conv3x3(v, w_ref, b_ref):
        # 3x3 / stride 1 / pad 1 conv as ONE MXU matmul:
        #   (H, 3*W*Cin) @ (3*W*Cin, W*Cout)
        p = jnp.concatenate([shift_rows(v, +1), v, shift_rows(v, -1)], axis=1)
        return jnp.dot(p, w_ref[...], preferred_element_type=jnp.float32) + b_ref[...]

    def inorm_relu(y):
        # InstanceNorm2d (affine=False, biased variance, eps=1e-5) + ReLU.
        # Per-channel spatial stats via the pre-scaled channel-projection matmul
        # so the data never leaves the lane-dense (H, W*C) layout.
        col_sum = jnp.sum(y, axis=0, keepdims=True)                       # (1, W*C)
        mean = jnp.dot(col_sum, proj_ref[...],
                       preferred_element_type=jnp.float32)                # per-lane mean
        yc = y - mean
        var = jnp.dot(jnp.sum(yc * yc, axis=0, keepdims=True), proj_ref[...],
                      preferred_element_type=jnp.float32)                 # per-lane var
        return jnp.maximum(yc * jax.lax.rsqrt(var + EPS), 0.0)

    h1 = inorm_relu(conv3x3(x_ref[0], w1_ref, b1_ref))        # (H, W*Cout)
    o_ref[0] = inorm_relu(conv3x3(h1, w2_ref, b2_ref))        # lane-dense store


def _banded_conv_weight(w_hwio, w_spatial):
    """Fold the 3 kx taps and the width zero-padding of a 3x3/pad-1 conv into a
    block-banded (3*W*Cin, W*Cout) matrix, so the whole conv is a single matmul
    against the lane-dense (H, W*Cin) activation slab (ky handled by row shifts).
    """
    KH, KW, Cin, Cout = w_hwio.shape
    xi = jnp.arange(w_spatial)[:, None]            # input column
    xo = jnp.arange(w_spatial)[None, :]            # output column
    kx = xi - xo + 1                               # tap index, valid in [0, KW)
    valid = (kx >= 0) & (kx < KW)
    g = w_hwio[:, jnp.clip(kx, 0, KW - 1), :, :]   # (KH, W, W, Cin, Cout)
    g = jnp.where(valid[None, :, :, None, None], g, 0.0)
    g = jnp.transpose(g, (0, 1, 3, 2, 4))          # (ky, x_in, ci, x_out, co)
    return g.reshape(KH * w_spatial * Cin, w_spatial * Cout)


def bilinear_upsample_2x(x):
    """nn.Upsample(scale_factor=2, mode='bilinear', align_corners=False) on NCHW,
    written as fixed 0.25/0.75 taps with edge clamping (no gathers)."""

    def up_rows(v):  # axis 2
        prev = jnp.concatenate([v[:, :, :1], v[:, :, :-1]], axis=2)
        nxt = jnp.concatenate([v[:, :, 1:], v[:, :, -1:]], axis=2)
        even = 0.25 * prev + 0.75 * v
        odd = 0.75 * v + 0.25 * nxt
        return jnp.stack([even, odd], axis=3).reshape(
            v.shape[0], v.shape[1], 2 * v.shape[2], v.shape[3])

    def up_cols(v):  # axis 3
        prev = jnp.concatenate([v[:, :, :, :1], v[:, :, :, :-1]], axis=3)
        nxt = jnp.concatenate([v[:, :, :, 1:], v[:, :, :, -1:]], axis=3)
        even = 0.25 * prev + 0.75 * v
        odd = 0.75 * v + 0.25 * nxt
        return jnp.stack([even, odd], axis=4).reshape(
            v.shape[0], v.shape[1], v.shape[2], 2 * v.shape[3])

    return up_cols(up_rows(x))


def upblock_forward(x, x_f, params):
    """x: (B, C1, H0, W0); x_f: (B, C2, 2*H0, 2*W0); NCHW, C1 + C2 == in_channel."""
    B, C1, H0, W0 = x.shape
    C2 = x_f.shape[1]
    Cin = C1 + C2
    H, W = 2 * H0, 2 * W0
    Cout = params["w2"].shape[-1]

    # --- JAX glue (jit-fused): upsample, concat, NHWC flatten ---------------
    x_up = bilinear_upsample_2x(x)                               # (B, C1, H, W)
    xin = jnp.concatenate([x_up, x_f], axis=1)                   # (B, Cin, H, W)
    x_flat = jnp.transpose(xin, (0, 2, 3, 1)).reshape(B, H, W * Cin)

    # --- constants: banded weights, lane-tiled biases, channel projection ---
    w1b = _banded_conv_weight(params["w1"], W)                   # (3*W*Cin,  W*Cout)
    w2b = _banded_conv_weight(params["w2"], W)                   # (3*W*Cout, W*Cout)
    b1r = jnp.tile(params["b1"][None, :], (1, W))                # (1, W*Cout)
    b2r = jnp.tile(params["b2"][None, :], (1, W))                # (1, W*Cout)
    lane_c = jnp.arange(W * Cout) % Cout
    proj = (lane_c[:, None] == lane_c[None, :]).astype(jnp.float32) / float(H * W)

    out_flat = pl.pallas_call(
        _upblock_kernel,
        out_shape=jax.ShapeDtypeStruct((B, H, W * Cout), jnp.float32),
        grid_spec=pltpu.PrefetchScalarGridSpec(
            num_scalar_prefetch=0,
            grid=(B,),
            in_specs=[
                pl.BlockSpec((1, H, W * Cin), lambda b: (b, 0, 0)),
                pl.BlockSpec((3 * W * Cin, W * Cout), lambda b: (0, 0)),
                pl.BlockSpec((1, W * Cout), lambda b: (0, 0)),
                pl.BlockSpec((3 * W * Cout, W * Cout), lambda b: (0, 0)),
                pl.BlockSpec((1, W * Cout), lambda b: (0, 0)),
                pl.BlockSpec((W * Cout, W * Cout), lambda b: (0, 0)),
            ],
            out_specs=pl.BlockSpec((1, H, W * Cout), lambda b: (b, 0, 0)),
        ),
        compiler_params=pltpu.CompilerParams(
            dimension_semantics=("parallel",)),
    )(x_flat, w1b, b1r, w2b, b2r, proj)

    return jnp.transpose(out_flat.reshape(B, H, W, Cout), (0, 3, 1, 2))  # NCHW


# ----------------------------- pure-JAX reference ----------------------------
def _ref_upsample_2x(x):
    _, _, H, W = x.shape

    def coords(n):
        src = (jnp.arange(2 * n, dtype=jnp.float32) + 0.5) / 2.0 - 0.5
        src = jnp.clip(src, 0.0, n - 1)
        i0 = jnp.floor(src).astype(jnp.int32)
        i1 = jnp.minimum(i0 + 1, n - 1)
        return i0, i1, src - i0.astype(jnp.float32)

    h0, h1, fh = coords(H)
    w0, w1, fw = coords(W)
    rows = (x[:, :, h0, :] * (1.0 - fh)[None, None, :, None]
            + x[:, :, h1, :] * fh[None, None, :, None])
    return (rows[:, :, :, w0] * (1.0 - fw)[None, None, None, :]
            + rows[:, :, :, w1] * fw[None, None, None, :])


def _ref_forward(x, x_f, params):
    xin = jnp.concatenate([_ref_upsample_2x(x), x_f], axis=1)

    def conv(inp, w, b):
        y = jax.lax.conv_general_dilated(
            inp, w, window_strides=(1, 1), padding=((1, 1), (1, 1)),
            dimension_numbers=("NCHW", "HWIO", "NCHW"))
        return y + b.reshape(1, -1, 1, 1)

    def inorm_relu(y):
        mean = jnp.mean(y, axis=(2, 3), keepdims=True)
        var = jnp.mean((y - mean) ** 2, axis=(2, 3), keepdims=True)
        return jnp.maximum((y - mean) * jax.lax.rsqrt(var + EPS), 0.0)

    h = inorm_relu(conv(xin, params["w1"], params["b1"]))
    return inorm_relu(conv(h, params["w2"], params["b2"]))


if __name__ == "__main__":
    # UpBlock(in_channel=8, out_channel=8); x has 4 channels, x_f has 4 channels.
    in_channel, out_channel = 8, 8
    B, C1, H0, W0 = 2, 4, 8, 8           # conv runs at 16x16 spatial
    C2 = in_channel - C1

    key = jax.random.PRNGKey(0)
    kx, kf, k1, k2, k3, k4 = jax.random.split(key, 6)
    x = jax.random.normal(kx, (B, C1, H0, W0), jnp.float32)
    x_f = jax.random.normal(kf, (B, C2, 2 * H0, 2 * W0), jnp.float32)

    # HWIO weights (Conv2d (Cout, Cin, 3, 3) transposed to (3, 3, Cin, Cout)).
    params = {
        "w1": jax.random.normal(k1, (3, 3, in_channel, out_channel), jnp.float32) * 0.2,
        "b1": jax.random.normal(k2, (out_channel,), jnp.float32) * 0.1,
        "w2": jax.random.normal(k3, (3, 3, out_channel, out_channel), jnp.float32) * 0.2,
        "b2": jax.random.normal(k4, (out_channel,), jnp.float32) * 0.1,
    }

    out = jax.block_until_ready(jax.jit(upblock_forward)(x, x_f, params))
    ref = jax.block_until_ready(_ref_forward(x, x_f, params))

    assert out.shape == (B, out_channel, 2 * H0, 2 * W0), out.shape
    assert jnp.allclose(out, ref, rtol=2e-2, atol=2e-2), float(jnp.max(jnp.abs(out - ref)))
    print("KERNEL_OK")
</pallas_src>

<mosaic_0001>
module attributes {stable_mosaic.version = 11 : i64} {
  func.func @_upblock_kernel(%arg0: i32, %arg1: memref<1x16x128xf32, #tpu.memory_space<vmem>>, %arg2: memref<384x128xf32, #tpu.memory_space<vmem>>, %arg3: memref<1x128xf32, #tpu.memory_space<vmem>>, %arg4: memref<384x128xf32, #tpu.memory_space<vmem>>, %arg5: memref<1x128xf32, #tpu.memory_space<vmem>>, %arg6: memref<128x128xf32, #tpu.memory_space<vmem>>, %arg7: memref<1x16x128xf32, #tpu.memory_space<vmem>>) attributes {dimension_semantics = [#tpu.dimension_semantics<parallel>], iteration_bounds = array<i64: 2>, scalar_prefetch = 0 : i64, scratch_operands = 0 : i64, tpu.core_type = #tpu.core_type<tc>, window_params = [{transform_indices = @transform_0, window_bounds = array<i64: 1, 16, 128>}, {pipeline_mode = #tpu.pipeline_mode<synchronous>, transform_indices = @transform_1, window_bounds = array<i64: 384, 128>}, {pipeline_mode = #tpu.pipeline_mode<synchronous>, transform_indices = @transform_2, window_bounds = array<i64: 1, 128>}, {pipeline_mode = #tpu.pipeline_mode<synchronous>, transform_indices = @transform_3, window_bounds = array<i64: 384, 128>}, {pipeline_mode = #tpu.pipeline_mode<synchronous>, transform_indices = @transform_4, window_bounds = array<i64: 1, 128>}, {pipeline_mode = #tpu.pipeline_mode<synchronous>, transform_indices = @transform_5, window_bounds = array<i64: 128, 128>}, {transform_indices = @transform_6, window_bounds = array<i64: 1, 16, 128>}]} {
    %c0 = arith.constant 0 : index
    %c0_0 = arith.constant 0 : index
    %c0_1 = arith.constant 0 : index
    %0 = vector.load %arg1[%c0, %c0_0, %c0_1] : memref<1x16x128xf32, #tpu.memory_space<vmem>>, vector<1x16x128xf32>
    %1 = vector.shape_cast %0 : vector<1x16x128xf32> to vector<16x128xf32>
    %c1_i32 = arith.constant 1 : i32
    %2 = tpu.dynamic_rotate %1 by %c1_i32 dim 0 : vector<16x128xf32>, i32 -> vector<16x128xf32>
    %3 = tpu.iota {dimensions = array<i32: 0>} : vector<16x128xi32>
    %c0_i32 = arith.constant 0 : i32
    %4 = vector.broadcast %c0_i32 : i32 to vector<16x128xi32>
    %5 = arith.cmpi eq, %3, %4 : vector<16x128xi32>
    %cst = arith.constant 0.000000e+00 : f32
    %6 = vector.broadcast %cst : f32 to vector<16x128xf32>
    %7 = arith.select %5, %6, %2 : vector<16x128xi1>, vector<16x128xf32>
    %c15_i32 = arith.constant 15 : i32
    %8 = tpu.dynamic_rotate %1 by %c15_i32 dim 0 : vector<16x128xf32>, i32 -> vector<16x128xf32>
    %9 = tpu.iota {dimensions = array<i32: 0>} : vector<16x128xi32>
    %c15_i32_2 = arith.constant 15 : i32
    %10 = vector.broadcast %c15_i32_2 : i32 to vector<16x128xi32>
    %11 = arith.cmpi eq, %9, %10 : vector<16x128xi32>
    %cst_3 = arith.constant 0.000000e+00 : f32
    %12 = vector.broadcast %cst_3 : f32 to vector<16x128xf32>
    %13 = arith.select %11, %12, %8 : vector<16x128xi1>, vector<16x128xf32>
    %14 = tpu.concatenate %7, %1, %13 in 1 : vector<16x128xf32>, vector<16x128xf32>, vector<16x128xf32> -> vector<16x384xf32>
    %c0_4 = arith.constant 0 : index
    %c0_5 = arith.constant 0 : index
    %15 = vector.load %arg2[%c0_4, %c0_5] : memref<384x128xf32, #tpu.memory_space<vmem>>, vector<384x128xf32>
    %cst_6 = arith.constant dense<0.000000e+00> : vector<16x128xf32>
    %16 = tpu.matmul %14, %15, %cst_6 {dimension_numbers = #tpu.dot_dimension_numbers<[1], [0], [0], [1], [0, 0, 1, 1], [], []>} : vector<16x384xf32>, vector<384x128xf32>, vector<16x128xf32> -> vector<16x128xf32>
    %c0_7 = arith.constant 0 : index
    %c0_8 = arith.constant 0 : index
    %17 = vector.load %arg3[%c0_7, %c0_8] : memref<1x128xf32, #tpu.memory_space<vmem>>, vector<1x128xf32>
    %18 = vector.broadcast %17 : vector<1x128xf32> to vector<16x128xf32>
    %19 = arith.addf %16, %18 : vector<16x128xf32>
    %cst_9 = arith.constant dense<0.000000e+00> : vector<128xf32>
    %20 = vector.multi_reduction <add>, %19, %cst_9 [0] : vector<16x128xf32> to vector<128xf32>
    %21 = vector.shape_cast %20 : vector<128xf32> to vector<1x128xf32>
    %c0_10 = arith.constant 0 : index
    %c0_11 = arith.constant 0 : index
    %22 = vector.load %arg6[%c0_10, %c0_11] : memref<128x128xf32, #tpu.memory_space<vmem>>, vector<128x128xf32>
    %cst_12 = arith.constant dense<0.000000e+00> : vector<1x128xf32>
    %23 = tpu.matmul %21, %22, %cst_12 {dimension_numbers = #tpu.dot_dimension_numbers<[1], [0], [0], [1], [0, 0, 1, 1], [], []>} : vector<1x128xf32>, vector<128x128xf32>, vector<1x128xf32> -> vector<1x128xf32>
    %24 = vector.broadcast %23 : vector<1x128xf32> to vector<16x128xf32>
    %25 = arith.subf %19, %24 : vector<16x128xf32>
    %26 = arith.mulf %25, %25 : vector<16x128xf32>
    %cst_13 = arith.constant dense<0.000000e+00> : vector<128xf32>
    %27 = vector.multi_reduction <add>, %26, %cst_13 [0] : vector<16x128xf32> to vector<128xf32>
    %28 = vector.shape_cast %27 : vector<128xf32> to vector<1x128xf32>
    %c0_14 = arith.constant 0 : index
    %c0_15 = arith.constant 0 : index
    %29 = vector.load %arg6[%c0_14, %c0_15] : memref<128x128xf32, #tpu.memory_space<vmem>>, vector<128x128xf32>
    %cst_16 = arith.constant dense<0.000000e+00> : vector<1x128xf32>
    %30 = tpu.matmul %28, %29, %cst_16 {dimension_numbers = #tpu.dot_dimension_numbers<[1], [0], [0], [1], [0, 0, 1, 1], [], []>} : vector<1x128xf32>, vector<128x128xf32>, vector<1x128xf32> -> vector<1x128xf32>
    %cst_17 = arith.constant 9.99999974E-6 : f32
    %31 = vector.broadcast %cst_17 : f32 to vector<1x128xf32>
    %32 = arith.addf %30, %31 : vector<1x128xf32>
    %33 = math.rsqrt %32 : vector<1x128xf32>
    %34 = vector.broadcast %33 : vector<1x128xf32> to vector<16x128xf32>
    %35 = arith.mulf %25, %34 : vector<16x128xf32>
    %cst_18 = arith.constant 0.000000e+00 : f32
    %36 = vector.broadcast %cst_18 : f32 to vector<16x128xf32>
    %37 = arith.maximumf %35, %36 : vector<16x128xf32>
    %c1_i32_19 = arith.constant 1 : i32
    %38 = tpu.dynamic_rotate %37 by %c1_i32_19 dim 0 : vector<16x128xf32>, i32 -> vector<16x128xf32>
    %39 = tpu.iota {dimensions = array<i32: 0>} : vector<16x128xi32>
    %c0_i32_20 = arith.constant 0 : i32
    %40 = vector.broadcast %c0_i32_20 : i32 to vector<16x128xi32>
    %41 = arith.cmpi eq, %39, %40 : vector<16x128xi32>
    %cst_21 = arith.constant 0.000000e+00 : f32
    %42 = vector.broadcast %cst_21 : f32 to vector<16x128xf32>
    %43 = arith.select %41, %42, %38 : vector<16x128xi1>, vector<16x128xf32>
    %c15_i32_22 = arith.constant 15 : i32
    %44 = tpu.dynamic_rotate %37 by %c15_i32_22 dim 0 : vector<16x128xf32>, i32 -> vector<16x128xf32>
    %45 = tpu.iota {dimensions = array<i32: 0>} : vector<16x128xi32>
    %c15_i32_23 = arith.constant 15 : i32
    %46 = vector.broadcast %c15_i32_23 : i32 to vector<16x128xi32>
    %47 = arith.cmpi eq, %45, %46 : vector<16x128xi32>
    %cst_24 = arith.constant 0.000000e+00 : f32
    %48 = vector.broadcast %cst_24 : f32 to vector<16x128xf32>
    %49 = arith.select %47, %48, %44 : vector<16x128xi1>, vector<16x128xf32>
    %50 = tpu.concatenate %43, %37, %49 in 1 : vector<16x128xf32>, vector<16x128xf32>, vector<16x128xf32> -> vector<16x384xf32>
    %c0_25 = arith.constant 0 : index
    %c0_26 = arith.constant 0 : index
    %51 = vector.load %arg4[%c0_25, %c0_26] : memref<384x128xf32, #tpu.memory_space<vmem>>, vector<384x128xf32>
    %cst_27 = arith.constant dense<0.000000e+00> : vector<16x128xf32>
    %52 = tpu.matmul %50, %51, %cst_27 {dimension_numbers = #tpu.dot_dimension_numbers<[1], [0], [0], [1], [0, 0, 1, 1], [], []>} : vector<16x384xf32>, vector<384x128xf32>, vector<16x128xf32> -> vector<16x128xf32>
    %c0_28 = arith.constant 0 : index
    %c0_29 = arith.constant 0 : index
    %53 = vector.load %arg5[%c0_28, %c0_29] : memref<1x128xf32, #tpu.memory_space<vmem>>, vector<1x128xf32>
    %54 = vector.broadcast %53 : vector<1x128xf32> to vector<16x128xf32>
    %55 = arith.addf %52, %54 : vector<16x128xf32>
    %cst_30 = arith.constant dense<0.000000e+00> : vector<128xf32>
    %56 = vector.multi_reduction <add>, %55, %cst_30 [0] : vector<16x128xf32> to vector<128xf32>
    %57 = vector.shape_cast %56 : vector<128xf32> to vector<1x128xf32>
    %c0_31 = arith.constant 0 : index
    %c0_32 = arith.constant 0 : index
    %58 = vector.load %arg6[%c0_31, %c0_32] : memref<128x128xf32, #tpu.memory_space<vmem>>, vector<128x128xf32>
    %cst_33 = arith.constant dense<0.000000e+00> : vector<1x128xf32>
    %59 = tpu.matmul %57, %58, %cst_33 {dimension_numbers = #tpu.dot_dimension_numbers<[1], [0], [0], [1], [0, 0, 1, 1], [], []>} : vector<1x128xf32>, vector<128x128xf32>, vector<1x128xf32> -> vector<1x128xf32>
    %60 = vector.broadcast %59 : vector<1x128xf32> to vector<16x128xf32>
    %61 = arith.subf %55, %60 : vector<16x128xf32>
    %62 = arith.mulf %61, %61 : vector<16x128xf32>
    %cst_34 = arith.constant dense<0.000000e+00> : vector<128xf32>
    %63 = vector.multi_reduction <add>, %62, %cst_34 [0] : vector<16x128xf32> to vector<128xf32>
    %64 = vector.shape_cast %63 : vector<128xf32> to vector<1x128xf32>
    %c0_35 = arith.constant 0 : index
    %c0_36 = arith.constant 0 : index
    %65 = vector.load %arg6[%c0_35, %c0_36] : memref<128x128xf32, #tpu.memory_space<vmem>>, vector<128x128xf32>
    %cst_37 = arith.constant dense<0.000000e+00> : vector<1x128xf32>
    %66 = tpu.matmul %64, %65, %cst_37 {dimension_numbers = #tpu.dot_dimension_numbers<[1], [0], [0], [1], [0, 0, 1, 1], [], []>} : vector<1x128xf32>, vector<128x128xf32>, vector<1x128xf32> -> vector<1x128xf32>
    %cst_38 = arith.constant 9.99999974E-6 : f32
    %67 = vector.broadcast %cst_38 : f32 to vector<1x128xf32>
    %68 = arith.addf %66, %67 : vector<1x128xf32>
    %69 = math.rsqrt %68 : vector<1x128xf32>
    %70 = vector.broadcast %69 : vector<1x128xf32> to vector<16x128xf32>
    %71 = arith.mulf %61, %70 : vector<16x128xf32>
    %cst_39 = arith.constant 0.000000e+00 : f32
    %72 = vector.broadcast %cst_39 : f32 to vector<16x128xf32>
    %73 = arith.maximumf %71, %72 : vector<16x128xf32>
    %c0_40 = arith.constant 0 : index
    %c0_41 = arith.constant 0 : index
    %c0_42 = arith.constant 0 : index
    %74 = vector.load %arg7[%c0_40, %c0_41, %c0_42] : memref<1x16x128xf32, #tpu.memory_space<vmem>>, vector<1x16x128xf32>
    %75 = vector.shape_cast %74 : vector<1x16x128xf32> to vector<16x128xf32>
    %76 = vector.shape_cast %73 : vector<16x128xf32> to vector<1x16x128xf32>
    tpu.vector_store %arg7[%c0_40, %c0_41, %c0_42], %76 {strides = array<i32>} : memref<1x16x128xf32, #tpu.memory_space<vmem>>, vector<1x16x128xf32>,
    return
  }
  func.func @transform_0(%arg0: i32) -> (i32, i32, i32) {
    %c0_i32 = arith.constant 0 : i32
    %c0_i32_0 = arith.constant 0 : i32
    %c0_i32_1 = arith.constant 0 : i32
    return %arg0, %c0_i32, %c0_i32_0 : i32, i32, i32
  }
  func.func @transform_1(%arg0: i32) -> (i32, i32) {
    %c0_i32 = arith.constant 0 : i32
    %c0_i32_0 = arith.constant 0 : i32
    %c0_i32_1 = arith.constant 0 : i32
    return %c0_i32, %c0_i32_0 : i32, i32
  }
  func.func @transform_2(%arg0: i32) -> (i32, i32) {
    %c0_i32 = arith.constant 0 : i32
    %c0_i32_0 = arith.constant 0 : i32
    %c0_i32_1 = arith.constant 0 : i32
    return %c0_i32, %c0_i32_0 : i32, i32
  }
  func.func @transform_3(%arg0: i32) -> (i32, i32) {
    %c0_i32 = arith.constant 0 : i32
    %c0_i32_0 = arith.constant 0 : i32
    %c0_i32_1 = arith.constant 0 : i32
    return %c0_i32, %c0_i32_0 : i32, i32
  }
  func.func @transform_4(%arg0: i32) -> (i32, i32) {
    %c0_i32 = arith.constant 0 : i32
    %c0_i32_0 = arith.constant 0 : i32
    %c0_i32_1 = arith.constant 0 : i32
    return %c0_i32, %c0_i32_0 : i32, i32
  }
  func.func @transform_5(%arg0: i32) -> (i32, i32) {
    %c0_i32 = arith.constant 0 : i32
    %c0_i32_0 = arith.constant 0 : i32
    %c0_i32_1 = arith.constant 0 : i32
    return %c0_i32, %c0_i32_0 : i32, i32
  }
  func.func @transform_6(%arg0: i32) -> (i32, i32, i32) {
    %c0_i32 = arith.constant 0 : i32
    %c0_i32_0 = arith.constant 0 : i32
    %c0_i32_1 = arith.constant 0 : i32
    return %arg0, %c0_i32, %c0_i32_0 : i32, i32, i32
  }
}

</mosaic_0001>

<bundles_post_ra>
// kernel: upblock_forward.1
= control target key start
LH: loop header
LB: loop body
LE: loop exit
PB: predicated region body
PF: predicated region fallthrough
CT: control target
= control target key end

     0   :  { %s1586_s21 = smov 0   ;;  %s2180_s0 = inlined_call_operand.vmem [shape: f32[2,16,128], index: 0, kind: input, shape index: {}]   ;;  %s2181_s1 = inlined_call_operand.vmem [shape: f32[384,128], index: 1, kind: input, shape index: {}]   ;;  %s2182_s2 = inlined_call_operand.vmem [shape: f32[1,128], index: 2, kind: input, shape index: {}]   ;;  %s2183_s3 = inlined_call_operand.vmem [shape: f32[384,128], index: 3, kind: input, shape index: {}]   ;;  %s2184_s4 = inlined_call_operand.vmem [shape: f32[1,128], index: 4, kind: input, shape index: {}]   ;;  %s2185_s5 = inlined_call_operand.vmem [shape: f32[128,128], index: 5, kind: input, shape index: {}]   ;;  %s2186_s6 = inlined_call_operand.vmem [shape: f32[2,16,128], index: 6, kind: output, shape index: {}]  }
   0x1 LB: > { %s1112_s22 = sadd.s32 4294967295, %s1547_s21   ;;  %p1116_p0 = scmp.ge.s32.totalorder %s1547_s21, 1  ;;  %s1547_s21 = sphi %s1586_s21, %s16_s21  }
   0x2   : > { %p212_p1 = scmp.lt.s32.totalorder %s1547_s21, 3 }
   0x4   : > { %p213_p2 = pnand %p1116_p0, %p212_p1 }
   0x5   : > { %p1650_p3 = scmp.lt.s32.totalorder (!%p213_p2), %s1112_s22, 1 }
   0x6   : > { %216 = sbr.rel (%p213_p2) target bundleno = 1343 (0x53f), region = 44 }
   0xb   : > { %v306_v0 = vld [vmem:[%s2181_s1 + $0xf8] sm:$0xff]  ;;  %v305_v2 = vld [vmem:[%s2181_s1 + $0xf0] sm:$0xff]  ;;  %v304_v5 = vld [vmem:[%s2181_s1 + $0xe8] sm:$0xff]  ;;  %s2189_s22 = smov (!%p1650_p3, %s1112_s22), 1  ;;  %v256_v33 = vlaneseq  ;;  %v1549_v62 = vmov 0.0   ;;  %vm1550_vm4 = vmmov 0  }
   0xc   : > { %v290_v1 = vld [vmem:[%s2181_s1 + $0x78] sm:$0xff]  ;;  %1137 = vmatprep.subr.mxu0 %v306_v0  ;;  %v289_v3 = vld [vmem:[%s2181_s1 + $0x70] sm:$0xff]  ;;  %v288_v7 = vld [vmem:[%s2181_s1 + $0x68] sm:$0xff]  ;;  %s1133_s16 = sshll.u32 %s2189_s22, 4 }
   0xd   : > { %v322_v4 = vld [vmem:[%s2181_s1 + $0x178] sm:$0xff]  ;;  %1138 = vmatpush3.msra.mxu0 %v290_v1  ;;  %v321_v6 = vld [vmem:[%s2181_s1 + $0x170] sm:$0xff]  ;;  %v320_v8 = vld [vmem:[%s2181_s1 + $0x168] sm:$0xff]  ;;  %s246_s29 = scalar_lea.vmem %s2180_s0, %s1133_s16  ;;  %v1729_v42 = vshrl.u32 %v256_v33, 7  ;;  %s251_s24 = scalar_lea.vmem %s2186_s6, %s1133_s16 }
   0xe   : > { %1317 = vmatprep.subr.mxu1 %v322_v4  ;;  %1139 = vmatprep.subr.mxu0 %v305_v2  ;;  %v303_v9 = vld [vmem:[%s2181_s1 + $0xe0] sm:$0xff]  ;;  %v302_v12 = vld [vmem:[%s2181_s1 + $0xd8] sm:$0xff]  ;;  %v301_v15 = vld [vmem:[%s2181_s1 + $0xd0] sm:$0xff] }
   0xf   : > { %1318 = vmatpush3.msra.mxu1 %v322_v4  ;;  %1140 = vmatpush3.msra.mxu0 %v289_v3  ;;  %v287_v10 = vld [vmem:[%s2181_s1 + $0x60] sm:$0xff]  ;;  %v286_v13 = vld [vmem:[%s2181_s1 + $0x58] sm:$0xff]  ;;  %v285_v16 = vld [vmem:[%s2181_s1 + $0x50] sm:$0xff]  ;;  %vm258_vm0 = vcmp.lt.s32.totalorder %v1729_v42, 1  ;;  %vm268_vm1 = vcmp.lt.s32.totalorder %v1729_v42, 7  ;;  %v1758_v55 = vadd.s32 8, %v1729_v42 }
  0x10   : > { %1319 = vmatprep.subr.mxu1 %v321_v6  ;;  %1141 = vmatprep.subr.mxu0 %v304_v5  ;;  %v319_v11 = vld [vmem:[%s2181_s1 + $0x160] sm:$0xff]  ;;  %v318_v14 = vld [vmem:[%s2181_s1 + $0x158] sm:$0xff]  ;;  %v317_v17 = vld [vmem:[%s2181_s1 + $0x150] sm:$0xff]  ;;  %vm1135_vm2 = vcmp.ne.s32.totalorder %v1729_v42, 0 }
  0x11   : > { %1320 = vmatpush3.msra.mxu1 %v321_v6  ;;  %1142 = vmatpush3.msra.mxu0 %v288_v7  ;;  %v300_v18 = vld [vmem:[%s2181_s1 + $0xc8] sm:$0xff]  ;;  %v299_v21 = vld [vmem:[%s2181_s1 + $0xc0] sm:$0xff]  ;;  %v298_v24 = vld [vmem:[%s2181_s1 + $0xb8] sm:$0xff]  ;;  %vm1136_vm3 = vcmp.ne.s32.totalorder %v1758_v55, 15 }
  0x12   : > { %1321 = vmatprep.subr.mxu1 %v320_v8  ;;  %1143 = vmatprep.subr.mxu0 %v303_v9  ;;  %v284_v19 = vld [vmem:[%s2181_s1 + $0x48] sm:$0xff]  ;;  %v283_v22 = vld [vmem:[%s2181_s1 + $0x40] sm:$0xff]  ;;  %v282_v25 = vld [vmem:[%s2181_s1 + $0x38] sm:$0xff] }
  0x13   : > { %1322 = vmatpush3.msra.mxu1 %v320_v8  ;;  %1144 = vmatpush3.msra.mxu0 %v287_v10  ;;  %v316_v20 = vld [vmem:[%s2181_s1 + $0x148] sm:$0xff]  ;;  %v315_v23 = vld [vmem:[%s2181_s1 + $0x140] sm:$0xff]  ;;  %v314_v26 = vld [vmem:[%s2181_s1 + $0x138] sm:$0xff] }
  0x14   : > { %1323 = vmatprep.subr.mxu1 %v319_v11  ;;  %1145 = vmatprep.subr.mxu0 %v302_v12  ;;  %v297_v27 = vld [vmem:[%s2181_s1 + $0xb0] sm:$0xff]  ;;  %v296_v30 = vld [vmem:[%s2181_s1 + $0xa8] sm:$0xff]  ;;  %v295_v34 = vld [vmem:[%s2181_s1 + $0xa0] sm:$0xff] }
  0x15   : > { %1324 = vmatpush3.msra.mxu1 %v319_v11  ;;  %1146 = vmatpush3.msra.mxu0 %v286_v13  ;;  %v281_v28 = vld [vmem:[%s2181_s1 + $0x30] sm:$0xff]  ;;  %v280_v31 = vld [vmem:[%s2181_s1 + $0x28] sm:$0xff]  ;;  %v279_v35 = vld [vmem:[%s2181_s1 + $0x20] sm:$0xff] }
  0x16   : > { %1325 = vmatprep.subr.mxu1 %v318_v14  ;;  %1147 = vmatprep.subr.mxu0 %v301_v15  ;;  %v313_v29 = vld [vmem:[%s2181_s1 + $0x130] sm:$0xff]  ;;  %v312_v32 = vld [vmem:[%s2181_s1 + $0x128] sm:$0xff]  ;;  %v311_v36 = vld [vmem:[%s2181_s1 + $0x120] sm:$0xff] }
  0x17   : > { %1326 = vmatpush3.msra.mxu1 %v318_v14  ;;  %1148 = vmatpush3.msra.mxu0 %v285_v16  ;;  %v294_v37 = vld [vmem:[%s2181_s1 + $0x98] sm:$0xff]  ;;  %v252_v40 = vld [vmem:[%s246_s29] sm:$0xff]  ;;  %v253_v41 = vld [vmem:[%s246_s29 + $0x8] sm:$0xff] }
  0x18   : > { %1327 = vmatprep.subr.mxu1 %v317_v17  ;;  %1149 = vmatprep.subr.mxu0 %v300_v18  ;;  %v278_v38 = vld [vmem:[%s2181_s1 + $0x18] sm:$0xff]  ;;  %v293_v43 = vld [vmem:[%s2181_s1 + $0x90] sm:$0xff]  ;;  %v292_v46 = vld [vmem:[%s2181_s1 + $0x88] sm:$0xff]  ;;  %v254_v47 = vrot.slane %v252_v40, 7  ;;  %v255_v48 = vrot.slane %v253_v41, 7  ;;  %v266_v51 = vrot.slane %v252_v40, 1 }
  0x19   : > { %1328 = vmatpush3.msra.mxu1 %v317_v17  ;;  %1150 = vmatpush3.msra.mxu0 %v284_v19  ;;  %v310_v39 = vld [vmem:[%s2181_s1 + $0x118] sm:$0xff]  ;;  %v277_v44 = vld [vmem:[%s2181_s1 + $0x10] sm:$0xff]  ;;  %v276_v49 = vld [vmem:[%s2181_s1 + $0x8] sm:$0xff]  ;;  %v267_v53 = vrot.slane %v253_v41, 1 }
  0x1a   : > { %1329 = vmatprep.subr.mxu1 %v316_v20  ;;  %1151 = vmatprep.subr.mxu0 %v299_v21  ;;  %v309_v45 = vld [vmem:[%s2181_s1 + $0x110] sm:$0xff]  ;;  %v291_v50 = vld [vmem:[%s2181_s1 + $0x80] sm:$0xff]  ;;  %v308_v52 = vld [vmem:[%s2181_s1 + $0x108] sm:$0xff]  ;;  %v260_v56 = vsel %vm258_vm0, %v255_v48, %v254_v47  ;;  %v259_v61 = vsel %vm258_vm0, %v254_v47, %v255_v48 }
  0x1b   : > { %1330 = vmatpush3.msra.mxu1 %v316_v20  ;;  %1152 = vmatpush3.msra.mxu0 %v283_v22  ;;  %v275_v54 = vld [vmem:[%s2181_s1] sm:$0xff]  ;;  %v269_v58 = vsel %vm268_vm1, %v266_v51, %v267_v53  ;;  %v270_v59 = vsel %vm268_vm1, %v267_v53, %v266_v51  ;;  %v1776_v60 = vld [vmem:[%s2185_s5 + $0x78] sm:$0xff]  ;;  %v1784_v63 = vld [vmem:[%s2185_s5 + $0x70] sm:$0xff] }
  0x1c   : > { %1331 = vmatprep.subr.mxu1 %v315_v23  ;;  %1153 = vmatprep.subr.mxu0 %v298_v24  ;;  %v307_v57 = vld [vmem:[%s2181_s1 + $0x100] sm:$0xff]  ;;  %v1800_v0 = vld [vmem:[%s2185_s5 + $0x68] sm:$0xff]  ;;  %v1817_v2 = vld [vmem:[%s2185_s5 + $0x58] sm:$0xff] }
  0x1d   : > { %1332 = vmatpush3.msra.mxu1 %v315_v23  ;;  %1154 = vmatpush3.msra.mxu0 %v282_v25  ;;  %v1808_v1 = vld [vmem:[%s2185_s5 + $0x60] sm:$0xff]  ;;  %v1826_v3 = vld [vmem:[%s2185_s5 + $0x50] sm:$0xff]  ;;  %v1835_v4 = vld [vmem:[%s2185_s5 + $0x48] sm:$0xff] }
  0x1e   : > { %1333 = vmatprep.subr.mxu1 %v314_v26  ;;  %1155 = vmatprep.subr.mxu0 %v297_v27  ;;  %v1844_v5 = vld [vmem:[%s2185_s5 + $0x40] sm:$0xff]  ;;  %v1853_v6 = vld [vmem:[%s2185_s5 + $0x38] sm:$0xff]  ;;  %v1862_v7 = vld [vmem:[%s2185_s5 + $0x30] sm:$0xff] }
  0x1f   : > { %1334 = vmatpush3.msra.mxu1 %v314_v26  ;;  %1156 = vmatpush3.msra.mxu0 %v281_v28  ;;  %v1871_v8 = vld [vmem:[%s2185_s5 + $0x28] sm:$0xff]  ;;  %v1880_v9 = vld [vmem:[%s2185_s5 + $0x20] sm:$0xff]  ;;  %v1889_v10 = vld [vmem:[%s2185_s5 + $0x18] sm:$0xff] }
  0x20   : > { %1335 = vmatprep.subr.mxu1 %v313_v29  ;;  %1157 = vmatprep.subr.mxu0 %v296_v30  ;;  %v1898_v11 = vld [vmem:[%s2185_s5 + $0x10] sm:$0xff]  ;;  %v1907_v12 = vld [vmem:[%s2185_s5 + $0x8] sm:$0xff]  ;;  %v1916_v13 = vld [vmem:[%s2185_s5] sm:$0xff] }
  0x21   : > { %1336 = vmatpush3.msra.mxu1 %v313_v29  ;;  %1158 = vmatpush3.msra.mxu0 %v280_v31  ;;  %v1121_v19 = vld [vmem:[%s2182_s2] ss:$0 sm:$0xff] }
  0x22   : > { %1337 = vmatprep.subr.mxu1 %v312_v32  ;;  %1159 = vmatprep.subr.mxu0 %v295_v34  ;;  %v710_v34 = vld [vmem:[%s2183_s3 + $0xf8] sm:$0xff] }
  0x23   : > { %1338 = vmatpush3.msra.mxu1 %v312_v32  ;;  %1160 = vmatpush3.msra.mxu0 %v279_v35  ;;  %v694_v35 = vld [vmem:[%s2183_s3 + $0x78] sm:$0xff] }
  0x24   : > { %1339 = vmatprep.subr.mxu1 %v311_v36  ;;  %1161 = vmatprep.subr.mxu0 %v294_v37  ;;  %v709_v37 = vld [vmem:[%s2183_s3 + $0xf0] sm:$0xff] }
  0x25   : > { %1340 = vmatpush3.msra.mxu1 %v311_v36  ;;  %1162 = vmatpush3.msra.mxu0 %v278_v38  ;;  %v726_v36 = vld [vmem:[%s2183_s3 + $0x178] sm:$0xff]  ;;  %v693_v38 = vld [vmem:[%s2183_s3 + $0x70] sm:$0xff] }
  0x26   : > { %1341 = vmatprep.subr.mxu1 %v310_v39  ;;  %1163 = vmatprep.subr.mxu0 %v293_v43 }
  0x27   : > { %1342 = vmatpush3.msra.mxu1 %v310_v39  ;;  %1164 = vmatpush3.msra.mxu0 %v277_v44  ;;  %v708_v39 = vld [vmem:[%s2183_s3 + $0xe8] sm:$0xff] }
  0x28   : > { %1343 = vmatprep.subr.mxu1 %v309_v45  ;;  %1165 = vmatprep.subr.mxu0 %v292_v46 }
  0x29   : > { %394 = vmatprep.mubr.f32.mxu0 %v252_v40  ;;  %1166 = vmatpush3.msra.mxu0 %v276_v49  ;;  %v692_v40 = vld [vmem:[%s2183_s3 + $0x68] sm:$0xff] }
  0x2a   : > { %1344 = vmatpush3.msra.mxu1 %v309_v45  ;;  %1167 = vmatprep.subr.mxu0 %v291_v50 }
  0x2b   : > { %1345 = vmatprep.subr.mxu1 %v308_v52  ;;  %1168 = vmatpush3.msra.mxu0 %v275_v54 }
  0x2c   : > { %1346 = vmatpush3.msra.mxu1 %v308_v52  ;;  %1123 = vmatmul.mubr.msk.f32.vlgmr.msra.gmra.mxu0 %vm1135_vm2, %v260_v56 }
  0x2d   : > { %1347 = vmatprep.subr.mxu1 %v307_v57  ;;  %399 = vmatprep.mubr.f32.mxu0 %v253_v41  ;;  %v1950_v41 = vsub.s32 0, %v1729_v42 }
  0x2e   : > { %1348 = vmatpush3.msra.mxu1 %v307_v57  ;;  %1349 = vmatprep.mubr.f32.mxu1 %v269_v58  ;;  %v725_v58 = vld [vmem:[%s2183_s3 + $0x170] sm:$0xff] }
  0x2f   : > { %1352 = vmatprep.subr.mxu0 %v1549_v62  ;;  %1350 = vmatmul.mubr.msk.f32.vlgmr.msra.gmra.mxu1 %vm1136_vm3, %v270_v59  ;;  %v724_v59 = vld [vmem:[%s2183_s3 + $0x168] sm:$0xff] }
  0x30   : > { %1353 = vmatpush3.msra.mxu0 %v1776_v60  ;;  %1387 = vmatprep.subr.mxu1 %v1549_v62 }
  0x31   : > { %400 = vmatmul.mubr.f32.gmra.mxu0 %v259_v61  ;;  %1354 = vmatprep.subr.mxu0 %v1549_v62  ;;  %v707_v61 = vld [vmem:[%s2183_s3 + $0xe0] sm:$0xff] }
  0x32   : > { %1355 = vmatpush3.msra.mxu0 %v1784_v63  ;;  %1388 = vmatpush3.msra.mxu1 %v1776_v60 }
  0x33   : > { %1356 = vmatprep.subr.mxu0 %v1549_v62  ;;  %1389 = vmatprep.subr.mxu1 %v1549_v62 }
  0x34   : > { %1390 = vmatpush3.msra.mxu1 %v1784_v63  ;;  %1357 = vmatpush3.msra.mxu0 %v1800_v0 }
  0x35   : > { %1391 = vmatprep.subr.mxu1 %v1549_v62  ;;  %1358 = vmatprep.subr.mxu0 %v1549_v62 }
  0x36   : > { %1392 = vmatpush3.msra.mxu1 %v1800_v0  ;;  %1359 = vmatpush3.msra.mxu0 %v1808_v1 }
  0x37   : > { %1393 = vmatprep.subr.mxu1 %v1549_v62  ;;  %1360 = vmatprep.subr.mxu0 %v1549_v62 }
  0x38   : > { %1394 = vmatpush3.msra.mxu1 %v1808_v1  ;;  %1361 = vmatpush3.msra.mxu0 %v1817_v2 }
  0x39   : > { %1395 = vmatprep.subr.mxu1 %v1549_v62  ;;  %1362 = vmatprep.subr.mxu0 %v1549_v62 }
  0x3a   : > { %1396 = vmatpush3.msra.mxu1 %v1817_v2  ;;  %1363 = vmatpush3.msra.mxu0 %v1826_v3 }
  0x3b   : > { %1397 = vmatprep.subr.mxu1 %v1549_v62  ;;  %1364 = vmatprep.subr.mxu0 %v1549_v62 }
  0x3c   : > { %1398 = vmatpush3.msra.mxu1 %v1826_v3  ;;  %1365 = vmatpush3.msra.mxu0 %v1835_v4 }
  0x3d   : > { %1399 = vmatprep.subr.mxu1 %v1549_v62  ;;  %1366 = vmatprep.subr.mxu0 %v1549_v62 }
  0x3e   : > { %1400 = vmatpush3.msra.mxu1 %v1835_v4  ;;  %1367 = vmatpush3.msra.mxu0 %v1844_v5 }
  0x3f   : > { %1401 = vmatprep.subr.mxu1 %v1549_v62  ;;  %1368 = vmatprep.subr.mxu0 %v1549_v62 }
  0x40   : > { %1402 = vmatpush3.msra.mxu1 %v1844_v5  ;;  %1369 = vmatpush3.msra.mxu0 %v1853_v6 }
  0x41   : > { %1403 = vmatprep.subr.mxu1 %v1549_v62  ;;  %1370 = vmatprep.subr.mxu0 %v1549_v62 }
  0x42   : > { %1404 = vmatpush3.msra.mxu1 %v1853_v6  ;;  %1371 = vmatpush3.msra.mxu0 %v1862_v7 }
  0x43   : > { %1405 = vmatprep.subr.mxu1 %v1549_v62  ;;  %1372 = vmatprep.subr.mxu0 %v1549_v62 }
  0x44   : > { %1406 = vmatpush3.msra.mxu1 %v1862_v7  ;;  %1373 = vmatpush3.msra.mxu0 %v1871_v8 }
  0x45   : > { %1407 = vmatprep.subr.mxu1 %v1549_v62  ;;  %1374 = vmatprep.subr.mxu0 %v1549_v62 }
  0x46   : > { %1408 = vmatpush3.msra.mxu1 %v1871_v8  ;;  %1375 = vmatpush3.msra.mxu0 %v1880_v9 }
  0x47   : > { %1409 = vmatprep.subr.mxu1 %v1549_v62  ;;  %1376 = vmatprep.subr.mxu0 %v1549_v62 }
  0x48   : > { %1410 = vmatpush3.msra.mxu1 %v1880_v9  ;;  %1377 = vmatpush3.msra.mxu0 %v1889_v10 }
  0x49   : > { %1411 = vmatprep.subr.mxu1 %v1549_v62  ;;  %1378 = vmatprep.subr.mxu0 %v1549_v62 }
  0x4a   : > { %1412 = vmatpush3.msra.mxu1 %v1889_v10  ;;  %1379 = vmatpush3.msra.mxu0 %v1898_v11 }
  0x4b   : > { %1413 = vmatprep.subr.mxu1 %v1549_v62  ;;  %1380 = vmatprep.subr.mxu0 %v1549_v62 }
  0x4c   : > { %1414 = vmatpush3.msra.mxu1 %v1898_v11  ;;  %1381 = vmatpush3.msra.mxu0 %v1907_v12 }
  0x4d   : > { %1415 = vmatprep.subr.mxu1 %v1549_v62  ;;  %1382 = vmatprep.subr.mxu0 %v1549_v62 }
  0x4e   : > { %1416 = vmatpush3.msra.mxu1 %v1907_v12  ;;  %1383 = vmatpush3.msra.mxu0 %v1916_v13 }
  0x4f   : > { %1417 = vmatprep.subr.mxu1 %v1549_v62  ;;  %1384 = vmatprep.mubr.msk.f32.mxu0 %vm1550_vm4, %v1549_v62 }
  0x50   : > { %1418 = vmatpush3.msra.mxu1 %v1916_v13  ;;  %1419 = vmatprep.mubr.msk.f32.mxu1 %vm1550_vm4, %v1549_v62 }
  0x51   : > { %1227 = vmatprep.subr.mxu0 %v710_v34  ;;  %1422 = vmatprep.subr.mxu1 %v726_v36  ;;  %v700_v34 = vld [vmem:[%s2183_s3 + $0xa8] sm:$0xff] }
  0xec   : > { %v1169_v14 = vpop.f32.mrf.mxu0 }
  0xee   : > { %v1170_v15 = vpop.f32.mrf.mxu0 }
  0xef   : > { %v1171_v16 = vadd.f32 %v1170_v15, %v1169_v14  ;;  %v1351_v18 = vpop.f32.mrf.mxu1  ;;  %v691_v14 = vld [vmem:[%s2183_s3 + $0x60] sm:$0xff] }
  0xf0   : > { %v723_v15 = vld [vmem:[%s2183_s3 + $0x160] sm:$0xff] }
  0xf1   : > { %v1172_v17 = vpop.f32.mrf.mxu0  ;;  %v397_v22 = vadd.f32 %v1171_v16, %v1121_v19  ;;  %v471_v23 = vpop.f32.mrf.mxu1  ;;  %v706_v16 = vld [vmem:[%s2183_s3 + $0xd8] sm:$0xff] }
  0xf3   : > { %v1173_v20 = vpop.f32.mrf.mxu0  ;;  %v472_v25 = vadd.f32 %v471_v23, %v397_v22  ;;  %v704_v22 = vld [vmem:[%s2183_s3 + $0xc8] sm:$0xff] }
  0xf4   : > { %v1174_v21 = vadd.f32 %v1173_v20, %v1172_v17  ;;  %v690_v17 = vld [vmem:[%s2183_s3 + $0x58] sm:$0xff]  ;;  %v689_v20 = vld [vmem:[%s2183_s3 + $0x50] sm:$0xff]  ;;  %v688_v23 = vld [vmem:[%s2183_s3 + $0x48] sm:$0xff] }
  0xf6   : > { %v402_v24 = vadd.f32 %v1174_v21, %v1121_v19  ;;  %v705_v19 = vld [vmem:[%s2183_s3 + $0xd0] sm:$0xff] }
  0xf7   : > { %v721_v21 = vld [vmem:[%s2183_s3 + $0x150] sm:$0xff] }
  0xf8   : > { %v477_v26 = vadd.f32 %v1351_v18, %v402_v24  ;;  %v722_v18 = vld [vmem:[%s2183_s3 + $0x158] sm:$0xff]  ;;  %v720_v24 = vld [vmem:[%s2183_s3 + $0x148] sm:$0xff] }
  0xfa   : > { %v480_v27 = vadd.f32 %v477_v26, %v472_v25 }
  0xfc   : > { %v481_v28 = vrot.slane %v480_v27, 4 }
  0xfe   : > { %v482_v29 = vadd.f32 %v481_v28, %v480_v27  ;;  %v719_v27 = vld [vmem:[%s2183_s3 + $0x140] sm:$0xff]  ;;  %v702_v28 = vld [vmem:[%s2183_s3 + $0xb8] sm:$0xff] }
 0x100   : > { %v483_v30 = vrot.slane %v482_v29, 2 }
 0x102   : > { %v484_v31 = vadd.f32 %v483_v30, %v482_v29  ;;  %v686_v29 = vld [vmem:[%s2183_s3 + $0x38] sm:$0xff] }
 0x103   : > { %v718_v30 = vld [vmem:[%s2183_s3 + $0x138] sm:$0xff] }
 0x104   : > { %v485_v32 = vrot.slane %v484_v31, 1 }
 0x106   : > { %v486_v33 = vadd.f32 %v485_v32, %v484_v31  ;;  %v701_v31 = vld [vmem:[%s2183_s3 + $0xb0] sm:$0xff] }
 0x107   : > { %v685_v32 = vld [vmem:[%s2183_s3 + $0x30] sm:$0xff] }
 0x108   : > { %1385 = vmatmul.mubr.f32.vlgmr.msra.gmra.mxu0 %v486_v33  ;;  %v717_v33 = vld [vmem:[%s2183_s3 + $0x130] sm:$0xff] }
 0x109   : > { %1228 = vmatpush3.msra.mxu0 %v694_v35  ;;  %v684_v35 = vld [vmem:[%s2183_s3 + $0x28] sm:$0xff] }
 0x10a   : > { %1229 = vmatprep.subr.mxu0 %v709_v37  ;;  %v699_v37 = vld [vmem:[%s2183_s3 + $0xa0] sm:$0xff] }
 0x10b   : > { %1230 = vmatpush3.msra.mxu0 %v693_v38  ;;  %v683_v38 = vld [vmem:[%s2183_s3 + $0x20] sm:$0xff] }
 0x10c   : > { %1231 = vmatprep.subr.mxu0 %v708_v39  ;;  %v715_v39 = vld [vmem:[%s2183_s3 + $0x120] sm:$0xff] }
 0x10d   : > { %1232 = vmatpush3.msra.mxu0 %v692_v40  ;;  %v698_v40 = vld [vmem:[%s2183_s3 + $0x98] sm:$0xff] }
 0x10e   : > { %1233 = vmatprep.subr.mxu0 %v707_v61 }
 0x10f   : > { %1234 = vmatpush3.msra.mxu0 %v691_v14 }
 0x110   : > { %1235 = vmatprep.subr.mxu0 %v706_v16 }
 0x111   : > { %1236 = vmatpush3.msra.mxu0 %v690_v17 }
 0x112   : > { %1237 = vmatprep.subr.mxu0 %v705_v19 }
 0x113   : > { %1238 = vmatpush3.msra.mxu0 %v689_v20 }
 0x114   : > { %1239 = vmatprep.subr.mxu0 %v704_v22 }
 0x115   : > { %1240 = vmatpush3.msra.mxu0 %v688_v23 }
 0x1c8   : > { %v569_v43 = vpop.f32.mrf.mxu0 }
 0x1c9   : > { %v576_v44 = vrot.slane %v569_v43, %v1950_v41  ;;  %v682_v43 = vld [vmem:[%s2183_s3 + $0x18] sm:$0xff] }
 0x1ca   : > { %v1386_v45 = vpop.f32.mrf.mxu0 }
 0x1cb   : > { %v1953_v46 = vsub.f32 %v472_v25, %v576_v44  ;;  %v1955_v47 = vsub.f32 %v477_v26, %v576_v44  ;;  %v703_v25 = vld [vmem:[%s2183_s3 + $0xc0] sm:$0xff]  ;;  %v714_v44 = vld [vmem:[%s2183_s3 + $0x118] sm:$0xff]  ;;  %v697_v45 = vld [vmem:[%s2183_s3 + $0x90] sm:$0xff] }
 0x1cc   : > { %v687_v26 = vld [vmem:[%s2183_s3 + $0x40] sm:$0xff]  ;;  %1241 = vmatprep.subr.mxu0 %v703_v25 }
 0x1cd   : > { %v579_v48 = vmul.f32 %v1953_v46, %v1953_v46  ;;  %v580_v49 = vmul.f32 %v1955_v47, %v1955_v47  ;;  %1242 = vmatpush3.msra.mxu0 %v687_v26 }
 0x1ce   : > { %1243 = vmatprep.subr.mxu0 %v702_v28 }
 0x1cf   : > { %v581_v50 = vadd.f32 %v580_v49, %v579_v48  ;;  %1244 = vmatpush3.msra.mxu0 %v686_v29  ;;  %v681_v48 = vld [vmem:[%s2183_s3 + $0x10] sm:$0xff] }
 0x1d0   : > { %1245 = vmatprep.subr.mxu0 %v701_v31  ;;  %v713_v49 = vld [vmem:[%s2183_s3 + $0x110] sm:$0xff] }
 0x1d1   : > { %v582_v51 = vrot.slane %v581_v50, 4  ;;  %1246 = vmatpush3.msra.mxu0 %v685_v32 }
 0x1d2   : > { %1247 = vmatprep.subr.mxu0 %v700_v34 }
 0x1d3   : > { %v583_v52 = vadd.f32 %v582_v51, %v581_v50  ;;  %1248 = vmatpush3.msra.mxu0 %v684_v35  ;;  %v696_v50 = vld [vmem:[%s2183_s3 + $0x88] sm:$0xff] }
 0x1d4   : > { %1249 = vmatprep.subr.mxu0 %v699_v37  ;;  %v680_v51 = vld [vmem:[%s2183_s3 + $0x8] sm:$0xff] }
 0x1d5   : > { %v584_v53 = vrot.slane %v583_v52, 2  ;;  %1250 = vmatpush3.msra.mxu0 %v683_v38 }
 0x1d6   : > { %1251 = vmatprep.subr.mxu0 %v698_v40 }
 0x1d7   : > { %v585_v54 = vadd.f32 %v584_v53, %v583_v52  ;;  %1252 = vmatpush3.msra.mxu0 %v682_v43  ;;  %v712_v52 = vld [vmem:[%s2183_s3 + $0x108] sm:$0xff]  ;;  %v695_v53 = vld [vmem:[%s2183_s3 + $0x80] sm:$0xff] }
 0x1d8   : > { %1253 = vmatprep.subr.mxu0 %v697_v45 }
 0x1d9   : > { %v586_v56 = vrot.slane %v585_v54, 1  ;;  %1254 = vmatpush3.msra.mxu0 %v681_v48 }
 0x1da   : > { %1255 = vmatprep.subr.mxu0 %v696_v50 }
 0x1db   : > { %v587_v57 = vadd.f32 %v586_v56, %v585_v54  ;;  %1256 = vmatpush3.msra.mxu0 %v680_v51  ;;  %v679_v54 = vld [vmem:[%s2183_s3] sm:$0xff] }
 0x1dc   : > { %v711_v56 = vld [vmem:[%s2183_s3 + $0x100] sm:$0xff]  ;;  %1257 = vmatprep.subr.mxu0 %v695_v53 }
 0x1dd   : > { %1420 = vmatmul.mubr.f32.vlgmr.msra.gmra.mxu1 %v587_v57  ;;  %1258 = vmatpush3.msra.mxu0 %v679_v54 }
 0x1de   : > { %1423 = vmatpush3.msra.mxu1 %v726_v36  ;;  %v716_v36 = vld [vmem:[%s2183_s3 + $0x128] sm:$0xff]  ;;  %1457 = vmatprep.subr.mxu0 %v1549_v62 }
 0x1df   : > { %1424 = vmatprep.subr.mxu1 %v725_v58 }
 0x1e0   : > { %1425 = vmatpush3.msra.mxu1 %v725_v58 }
 0x1e1   : > { %1426 = vmatprep.subr.mxu1 %v724_v59 }
 0x1e2   : > { %1427 = vmatpush3.msra.mxu1 %v724_v59 }
 0x1e3   : > { %1428 = vmatprep.subr.mxu1 %v723_v15 }
 0x1e4   : > { %1429 = vmatpush3.msra.mxu1 %v723_v15 }
 0x1e5   : > { %1430 = vmatprep.subr.mxu1 %v722_v18 }
 0x1e6   : > { %1431 = vmatpush3.msra.mxu1 %v722_v18 }
 0x1e7   : > { %1432 = vmatprep.subr.mxu1 %v721_v21 }
 0x1e8   : > { %1433 = vmatpush3.msra.mxu1 %v721_v21 }
 0x1e9   : > { %1434 = vmatprep.subr.mxu1 %v720_v24 }
 0x1ea   : > { %1435 = vmatpush3.msra.mxu1 %v720_v24 }
 0x1eb   : > { %1436 = vmatprep.subr.mxu1 %v719_v27 }
 0x1ec   : > { %1437 = vmatpush3.msra.mxu1 %v719_v27 }
 0x1ed   : > { %1438 = vmatprep.subr.mxu1 %v718_v30 }
 0x1ee   : > { %1439 = vmatpush3.msra.mxu1 %v718_v30 }
 0x1ef   : > { %1440 = vmatprep.subr.mxu1 %v717_v33 }
 0x1f0   : > { %1441 = vmatpush3.msra.mxu1 %v717_v33 }
 0x1f1   : > { %1442 = vmatprep.subr.mxu1 %v716_v36 }
 0x1f2   : > { %1443 = vmatpush3.msra.mxu1 %v716_v36 }
 0x1f3   : > { %1444 = vmatprep.subr.mxu1 %v715_v39 }
 0x1f4   : > { %1445 = vmatpush3.msra.mxu1 %v715_v39 }
 0x1f5   : > { %1446 = vmatprep.subr.mxu1 %v714_v44 }
 0x1f6   : > { %1447 = vmatpush3.msra.mxu1 %v714_v44 }
 0x1f7   : > { %1448 = vmatprep.subr.mxu1 %v713_v49 }
 0x1f8   : > { %1449 = vmatpush3.msra.mxu1 %v713_v49 }
 0x1f9   : > { %1450 = vmatprep.subr.mxu1 %v712_v52 }
 0x1fa   : > { %1451 = vmatpush3.msra.mxu1 %v712_v52 }
 0x1fb   : > { %1452 = vmatprep.subr.mxu1 %v711_v56 }
 0x1fc   : > { %1453 = vmatpush3.msra.mxu1 %v711_v56 }
 0x1fd   : > { %1492 = vmatprep.subr.mxu1 %v1549_v62 }
 0x29d   : > { %v654_v57 = vpop.f32.mrf.mxu1 }
 0x29e   : > { %v655_v58 = vadd.f32 1e-05, %v654_v57 }
 0x29f   : > { %v1421_v59 = vpop.f32.mrf.mxu1 }
 0x2a0   : > { %1537 = vrsqrt.f32 %v655_v58 }
 0x2ad   : > { %v1538_v61 = vpop.eup %1537 }
 0x2ae   : > { %v662_v14 = vrot.slane %v1538_v61, %v1950_v41 }
 0x2b0   : > { %v663_v15 = vmul.f32 %v662_v14, %v1953_v46  ;;  %v664_v16 = vmul.f32 %v662_v14, %v1955_v47 }
 0x2b2   : > { %v665_v17 = vmax.f32 %v663_v15, 0.0  ;;  %v666_v18 = vmax.f32 %v664_v16, 0.0 }
 0x2b4   : > { %v667_v19 = vrot.slane %v665_v17, 7  ;;  %798 = vmatprep.mubr.f32.mxu0 %v665_v17  ;;  %v668_v20 = vrot.slane %v666_v18, 7  ;;  %v673_v21 = vrot.slane %v665_v17, 1  ;;  %v674_v22 = vrot.slane %v666_v18, 1 }
 0x2b6   : > { %v670_v23 = vsel %vm258_vm0, %v668_v20, %v667_v19  ;;  %v675_v24 = vsel %vm268_vm1, %v673_v21, %v674_v22  ;;  %v676_v25 = vsel %vm268_vm1, %v674_v22, %v673_v21  ;;  %v669_v46 = vsel %vm258_vm0, %v667_v19, %v668_v20 }
 0x2b7   : > { %1128 = vmatmul.mubr.msk.f32.vlgmr.msra.gmra.mxu0 %vm1135_vm2, %v670_v23  ;;  %1454 = vmatprep.mubr.f32.mxu1 %v675_v24 }
 0x2b8   : > { %803 = vmatprep.mubr.f32.mxu0 %v666_v18  ;;  %1455 = vmatmul.mubr.msk.f32.vlgmr.msra.gmra.mxu1 %vm1136_vm3, %v676_v25 }
 0x2b9   : > { %1458 = vmatpush3.msra.mxu0 %v1776_v60  ;;  %1493 = vmatpush3.msra.mxu1 %v1776_v60 }
 0x2ba   : > { %1459 = vmatprep.subr.mxu0 %v1549_v62  ;;  %1494 = vmatprep.subr.mxu1 %v1549_v62 }
 0x2bb   : > { %804 = vmatmul.mubr.f32.gmra.mxu0 %v669_v46  ;;  %1495 = vmatpush3.msra.mxu1 %v1784_v63 }
 0x2bc   : > { %1460 = vmatpush3.msra.mxu0 %v1784_v63  ;;  %1489 = vmatprep.mubr.msk.f32.mxu0 %vm1550_vm4, %v1549_v62  ;;  %v1126_v63 = vld [vmem:[%s2184_s4] ss:$0 sm:$0xff] }
 0x2bd   : > { %1461 = vmatprep.subr.mxu0 %v1549_v62  ;;  %1496 = vmatprep.subr.mxu1 %v1549_v62 }
 0x2be   : > { %1462 = vmatpush3.msra.mxu0 %v1800_v0  ;;  %1497 = vmatpush3.msra.mxu1 %v1800_v0 }
 0x2bf   : > { %1463 = vmatprep.subr.mxu0 %v1549_v62  ;;  %1498 = vmatprep.subr.mxu1 %v1549_v62 }
 0x2c0   : > { %1464 = vmatpush3.msra.mxu0 %v1808_v1  ;;  %1499 = vmatpush3.msra.mxu1 %v1808_v1 }
 0x2c1   : > { %1465 = vmatprep.subr.mxu0 %v1549_v62  ;;  %1500 = vmatprep.subr.mxu1 %v1549_v62 }
 0x2c2   : > { %1466 = vmatpush3.msra.mxu0 %v1817_v2  ;;  %1501 = vmatpush3.msra.mxu1 %v1817_v2 }
 0x2c3   : > { %1467 = vmatprep.subr.mxu0 %v1549_v62  ;;  %1502 = vmatprep.subr.mxu1 %v1549_v62 }
 0x2c4   : > { %1468 = vmatpush3.msra.mxu0 %v1826_v3  ;;  %1503 = vmatpush3.msra.mxu1 %v1826_v3 }
 0x2c5   : > { %1469 = vmatprep.subr.mxu0 %v1549_v62  ;;  %1504 = vmatprep.subr.mxu1 %v1549_v62 }
 0x2c6   : > { %1470 = vmatpush3.msra.mxu0 %v1835_v4  ;;  %1505 = vmatpush3.msra.mxu1 %v1835_v4 }
 0x2c7   : > { %1471 = vmatprep.subr.mxu0 %v1549_v62  ;;  %1506 = vmatprep.subr.mxu1 %v1549_v62 }
 0x2c8   : > { %1472 = vmatpush3.msra.mxu0 %v1844_v5  ;;  %1507 = vmatpush3.msra.mxu1 %v1844_v5 }
 0x2c9   : > { %1473 = vmatprep.subr.mxu0 %v1549_v62  ;;  %1508 = vmatprep.subr.mxu1 %v1549_v62 }
 0x2ca   : > { %1474 = vmatpush3.msra.mxu0 %v1853_v6  ;;  %1509 = vmatpush3.msra.mxu1 %v1853_v6 }
 0x2cb   : > { %1475 = vmatprep.subr.mxu0 %v1549_v62  ;;  %1510 = vmatprep.subr.mxu1 %v1549_v62 }
 0x2cc   : > { %1476 = vmatpush3.msra.mxu0 %v1862_v7  ;;  %1511 = vmatpush3.msra.mxu1 %v1862_v7 }
 0x2cd   : > { %1477 = vmatprep.subr.mxu0 %v1549_v62  ;;  %1512 = vmatprep.subr.mxu1 %v1549_v62 }
 0x2ce   : > { %1478 = vmatpush3.msra.mxu0 %v1871_v8  ;;  %1513 = vmatpush3.msra.mxu1 %v1871_v8 }
 0x2cf   : > { %1479 = vmatprep.subr.mxu0 %v1549_v62  ;;  %1514 = vmatprep.subr.mxu1 %v1549_v62 }
 0x2d0   : > { %1480 = vmatpush3.msra.mxu0 %v1880_v9  ;;  %1515 = vmatpush3.msra.mxu1 %v1880_v9 }
 0x2d1   : > { %1481 = vmatprep.subr.mxu0 %v1549_v62  ;;  %1516 = vmatprep.subr.mxu1 %v1549_v62 }
 0x2d2   : > { %1482 = vmatpush3.msra.mxu0 %v1889_v10  ;;  %1517 = vmatpush3.msra.mxu1 %v1889_v10 }
 0x2d3   : > { %1483 = vmatprep.subr.mxu0 %v1549_v62  ;;  %1518 = vmatprep.subr.mxu1 %v1549_v62 }
 0x2d4   : > { %1484 = vmatpush3.msra.mxu0 %v1898_v11  ;;  %1519 = vmatpush3.msra.mxu1 %v1898_v11 }
 0x2d5   : > { %1485 = vmatprep.subr.mxu0 %v1549_v62  ;;  %1520 = vmatprep.subr.mxu1 %v1549_v62 }
 0x2d6   : > { %1486 = vmatpush3.msra.mxu0 %v1907_v12  ;;  %1521 = vmatpush3.msra.mxu1 %v1907_v12 }
 0x2d7   : > { %1487 = vmatprep.subr.mxu0 %v1549_v62  ;;  %1522 = vmatprep.subr.mxu1 %v1549_v62 }
 0x2d8   : > { %1488 = vmatpush3.msra.mxu0 %v1916_v13  ;;  %1523 = vmatpush3.msra.mxu1 %v1916_v13 }
 0x2d9   : > { %1524 = vmatprep.mubr.msk.f32.mxu1 %vm1550_vm4, %v1549_v62 }
 0x377   : > { %v1259_v42 = vpop.f32.mrf.mxu0 }
 0x378   : > { %v1456_v1 = vpop.f32.mrf.mxu1 }
 0x379   : > { %v1260_v55 = vpop.f32.mrf.mxu0 }
 0x37a   : > { %v1261_v60 = vadd.f32 %v1260_v55, %v1259_v42  ;;  %v875_v6 = vpop.f32.mrf.mxu1 }
 0x37b   : > { %v1262_v0 = vpop.f32.mrf.mxu0 }
 0x37c   : > { %v801_v3 = vadd.f32 %v1261_v60, %v1126_v63 }
 0x37d   : > { %v1263_v2 = vpop.f32.mrf.mxu0 }
 0x37e   : > { %v1264_v4 = vadd.f32 %v1263_v2, %v1262_v0  ;;  %v876_v7 = vadd.f32 %v875_v6, %v801_v3 }
 0x380   : > { %v806_v5 = vadd.f32 %v1264_v4, %v1126_v63 }
 0x382   : > { %v881_v8 = vadd.f32 %v1456_v1, %v806_v5 }
 0x384   : > { %v884_v9 = vadd.f32 %v881_v8, %v876_v7 }
 0x386   : > { %v885_v10 = vrot.slane %v884_v9, 4 }
 0x388   : > { %v886_v11 = vadd.f32 %v885_v10, %v884_v9 }
 0x38a   : > { %v887_v62 = vrot.slane %v886_v11, 2 }
 0x38c   : > { %v888_v12 = vadd.f32 %v887_v62, %v886_v11 }
 0x38e   : > { %v889_v13 = vrot.slane %v888_v12, 1 }
 0x390   : > { %v890_v47 = vadd.f32 %v889_v13, %v888_v12 }
 0x392   : > { %1490 = vmatmul.mubr.f32.vlgmr.msra.gmra.mxu0 %v890_v47 }
 0x452   : > { %v957_v26 = vpop.f32.mrf.mxu0 }
 0x453   : > { %v964_v27 = vrot.slane %v957_v26, %v1950_v41 }
 0x454   : > { %v1491_v28 = vpop.f32.mrf.mxu0 }
 0x455   : > { %v965_v29 = vsub.f32 %v876_v7, %v964_v27  ;;  %v966_v30 = vsub.f32 %v881_v8, %v964_v27 }
 0x457   : > { %v967_v31 = vmul.f32 %v965_v29, %v965_v29  ;;  %v968_v32 = vmul.f32 %v966_v30, %v966_v30 }
 0x459   : > { %v969_v33 = vadd.f32 %v968_v32, %v967_v31 }
 0x45b   : > { %v970_v34 = vrot.slane %v969_v33, 4 }
 0x45d   : > { %v971_v35 = vadd.f32 %v970_v34, %v969_v33 }
 0x45f   : > { %v972_v36 = vrot.slane %v971_v35, 2 }
 0x461   : > { %v973_v37 = vadd.f32 %v972_v36, %v971_v35 }
 0x463   : > { %v974_v38 = vrot.slane %v973_v37, 1 }
 0x465   : > { %v975_v39 = vadd.f32 %v974_v38, %v973_v37 }
 0x467   : > { %1525 = vmatmul.mubr.f32.vlgmr.msra.gmra.mxu1 %v975_v39 }
 0x527   : > { %v1042_v40 = vpop.f32.mrf.mxu1 }
 0x528   : > { %v1043_v43 = vadd.f32 1e-05, %v1042_v40 }
 0x529   : > { %v1526_v44 = vpop.f32.mrf.mxu1 }
 0x52a   : > { %1539 = vrsqrt.f32 %v1043_v43 }
 0x537   : > { %v1540_v45 = vpop.eup %1539 }
 0x538   : > { %v1050_v48 = vrot.slane %v1540_v45, %v1950_v41 }
 0x53a   : > { %v1051_v49 = vmul.f32 %v1050_v48, %v965_v29  ;;  %v1052_v50 = vmul.f32 %v1050_v48, %v966_v30 }
 0x53c   : > { %v1053_v51 = vmax.f32 %v1051_v49, 0.0  ;;  %v1054_v52 = vmax.f32 %v1052_v50, 0.0 }
 0x53e   : > { %1055 = vst [vmem:[%s251_s24] sm:$0xff] %v1053_v51  ;;  %1056 = vst [vmem:[%s251_s24 + $0x8] sm:$0xff] %v1054_v52 }
 0x53f PF: > { %s16_s21 = sadd.s32 1, %s1547_s21  }
 0x540   : > { %p13_p4 = scmp.ge.s32.totalorder %s16_s21, 4  }
 0x542   :  { %15 = sbr.rel (!%p13_p4) target bundleno = 1 (0x1), region = 74 }

</bundles_post_ra>
